<compile_context>
chip_gen: v7x
topology: tpu7x:2x2x1
jax: 0.10.0
libtpu: 0.0.40
codegen_flags: <defaults>
</compile_context>

<pallas_src>
import functools

import jax
import jax.numpy as jnp
import numpy as np
from jax.experimental import pallas as pl
from jax.experimental.pallas import tpu as pltpu


def _round_up(x, m):
    return ((x + m - 1) // m) * m


def _cdiv(a, b):
    return -(-a // b)


def _choose_tile(batch, tile_b):
    """Pick a batch tile: multiple of 8, and >=2 tiles when the batch allows
    (v7x megacore load balance on the 'parallel' grid axis)."""
    b8 = _round_up(max(int(batch), 1), 8)
    t = _round_up(max(8, min(int(tile_b), b8)), 8)
    if b8 > 8 and b8 <= t:          # whole batch would be a single tile: split it
        t = _round_up(_cdiv(b8, 2), 8)
    return t


def _transe_kernel(h_ref, t_ref, c_ref, ridx_ref, rel_ref, out_ref, *,
                   margin, corrupt_head, use_mxu_reduce):
    """One batch tile of  pos - neg + margin.

    h_ref, t_ref : (tile_b, D) f32 gathered head / tail embeddings
    c_ref        : (1, D) f32 pre-normalized corrupted-candidate row (resident)
    ridx_ref     : (tile_b, 1) int32 relation indices
    rel_ref      : (num_rel_pad, D) f32 relation table (VMEM-resident)
    out_ref      : (1, tile_b) f32 lane-dense scores
    margin, corrupt_head, use_mxu_reduce : static Python values
    """
    eps = 1e-12                                   # F.normalize default eps
    tile_b, D = h_ref.shape
    nrel = rel_ref.shape[0]

    ones_col = jnp.ones((D, 1), jnp.float32)      # lane reduce on the MXU
    ones_rows = jnp.ones((8, D), jnp.float32)     # lane-dense row-form reduce

    def sumsq_col(x):                             # (tile_b, 1)
        if use_mxu_reduce:
            return jnp.dot(x * x, ones_col, preferred_element_type=jnp.float32)
        return jnp.sum(x * x, axis=-1, keepdims=True)   # XLU path (v5e)

    def sumsq_row(x):                             # (1, tile_b), MXU trans_b dot
        ss = pl.dot(ones_rows, x * x, trans_b=True)     # (8, tile_b)
        return ss[0:1, :]

    def normalize(x):                             # x / max(||x||, eps)
        return x * jax.lax.rsqrt(jnp.maximum(sumsq_col(x), eps * eps))

    h = normalize(h_ref[...])                     # F.normalize(ent_embeds[h])
    t = normalize(t_ref[...])                     # F.normalize(val_embeds[t])
    c = c_ref[...]                                # (1, D), normalized in wrapper

    # In-kernel relation "gather": one-hot @ resident table on the idle MXU.
    onehot = (jax.lax.broadcasted_iota(jnp.int32, (tile_b, nrel), 1)
              == ridx_ref[...]).astype(jnp.float32)          # (tile_b, nrel)
    r = jnp.dot(onehot, rel_ref[...], preferred_element_type=jnp.float32)

    if corrupt_head:
        rt = r - t                                # shared between pos and neg
        pos_vec = h + rt                          # (tile_b, D)
        neg_vec = c + rt                          # (1,D) broadcast over the tile
    else:
        hr = h + r
        pos_vec = hr - t
        neg_vec = hr - c

    pos = jnp.sqrt(sumsq_row(pos_vec))            # (1, tile_b) torch.norm(.,-1)
    neg = jnp.sqrt(sumsq_row(neg_vec))
    out_ref[...] = pos - neg + margin


def transe_forward(data, ent_embeds, rel_embeds, val_embeds, margin,
                   corrupt_head_flag, rand_ent_idx, rand_val_idx,
                   tile_b=2048, use_mxu_reduce=True):
    """Pallas-backed TransE.forward.

    data: (B, 3) int32 triples (head_idx, rel_idx, tail_idx)
    corrupt_head_flag / rand_*_idx: host-side RNG outcomes (static Python
        values), mirroring the torch module's np.random corruption choice.
    use_mxu_reduce: keep True on v6e/v7x; False keeps the normalization reduce
        on the XLU (roughly neutral on v5e).
    returns: (B,) f32 scores = pos - neg + margin
    """
    B = int(data.shape[0])
    D = int(ent_embeds.shape[1])
    corrupt_head = bool(corrupt_head_flag)
    eps = 1e-12

    # --- tile / pad the batch ------------------------------------------------
    tile = _choose_tile(B, tile_b)
    B_pad = _round_up(B, tile)
    n_tiles = B_pad // tile

    if B_pad != B:
        # pad with index-0 triples (valid rows); padded scores are sliced off
        pad = jnp.zeros((B_pad - B, data.shape[1]), dtype=data.dtype)
        data_p = jnp.concatenate([data, pad], axis=0)
    else:
        data_p = data

    # --- h / t gathers: XLA glue, fusable into the kernel's input pipeline ----
    h_raw = ent_embeds[data_p[:, 0]].astype(jnp.float32)      # (B_pad, D)
    t_raw = val_embeds[data_p[:, 2]].astype(jnp.float32)      # (B_pad, D)

    # --- relation: index column + VMEM-resident (padded) table ----------------
    num_rel = int(rel_embeds.shape[0])
    nrel_pad = _round_up(max(num_rel, 128), 128)              # MXU-friendly K
    rel_tab = rel_embeds.astype(jnp.float32)
    if nrel_pad != num_rel:
        rel_tab = jnp.concatenate(
            [rel_tab, jnp.zeros((nrel_pad - num_rel, D), jnp.float32)], axis=0)
    r_idx = data_p[:, 1].astype(jnp.int32).reshape(B_pad, 1)  # 4 B/row stream

    # --- single corrupted candidate row, pre-normalized (static choice) -------
    if corrupt_head:
        c_raw = ent_embeds[rand_ent_idx][None, :].astype(jnp.float32)
    else:
        c_raw = val_embeds[rand_val_idx][None, :].astype(jnp.float32)
    c_norm = c_raw / jnp.maximum(
        jnp.sqrt(jnp.sum(c_raw * c_raw, axis=-1, keepdims=True)), eps)

    kernel = functools.partial(_transe_kernel,
                               margin=float(margin),
                               corrupt_head=corrupt_head,
                               use_mxu_reduce=bool(use_mxu_reduce))

    out = pl.pallas_call(
        kernel,
        out_shape=jax.ShapeDtypeStruct((n_tiles, 1, tile), jnp.float32),
        grid=(n_tiles,),
        in_specs=[
            pl.BlockSpec((tile, D), lambda i: (i, 0)),        # h rows
            pl.BlockSpec((tile, D), lambda i: (i, 0)),        # t rows
            pl.BlockSpec((1, D), lambda i: (0, 0)),           # candidate (resident)
            pl.BlockSpec((tile, 1), lambda i: (i, 0)),        # relation idx column
            pl.BlockSpec((nrel_pad, D), lambda i: (0, 0)),    # rel table (resident)
        ],
        out_specs=pl.BlockSpec((None, 1, tile), lambda i: (i, 0, 0)),  # lane-dense
        compiler_params=pltpu.CompilerParams(
            dimension_semantics=("parallel",),      # shard tiles across v7x's TCs
            allow_input_fusion=[True, True, False, False, False],
        ),
    )(h_raw, t_raw, c_norm, r_idx, rel_tab)

    return out.reshape(B_pad)[:B]


def _xavier_uniform(key, n_rows, n_cols):
    # nn.init.xavier_uniform_ for a (n_rows, n_cols) weight
    bound = float(np.sqrt(6.0 / (n_rows + n_cols)))
    return jax.random.uniform(key, (n_rows, n_cols), jnp.float32,
                              minval=-bound, maxval=bound)


def _reference_forward(data, ent_embeds, rel_embeds, val_embeds, margin,
                       corrupt_head_flag, rand_ent_idx, rand_val_idx):
    """Pure-JAX reference for correctness checking."""
    eps = 1e-12

    def normalize(x):
        n = jnp.sqrt(jnp.sum(x * x, axis=-1, keepdims=True))
        return x / jnp.maximum(n, eps)

    h = normalize(ent_embeds[data[:, 0]])
    r = rel_embeds[data[:, 1]]
    t = normalize(val_embeds[data[:, 2]])
    hc = normalize(ent_embeds[rand_ent_idx][None, :])
    tc = normalize(val_embeds[rand_val_idx][None, :])
    if corrupt_head_flag == 1:
        h_neg, t_neg = hc, t
    else:
        h_neg, t_neg = h, tc
    pos = jnp.linalg.norm(h + r - t, axis=-1)
    neg = jnp.linalg.norm(h_neg + r - t_neg, axis=-1)
    return pos - neg + margin


if __name__ == "__main__":
    # small, deterministic problem setup
    NUM_ENT, NUM_REL, NUM_VAL = 16, 4, 16
    EMBED_DIM = 128      # lane-aligned embedding dim
    BATCH = 20           # NOT a multiple of the tile -> exercises padding
    MARGIN = 1.0

    key = jax.random.PRNGKey(0)
    k_ent, k_rel, k_val, k_data, k_choice, k_rent, k_rval = jax.random.split(key, 7)

    # deterministic "xavier_uniform_" embedding tables
    ent_embeds = _xavier_uniform(k_ent, NUM_ENT, EMBED_DIM)
    rel_embeds = _xavier_uniform(k_rel, NUM_REL, EMBED_DIM)
    val_embeds = _xavier_uniform(k_val, NUM_VAL, EMBED_DIM)

    # training triples (B, 3): (head_idx, rel_idx, tail_idx)
    data = jnp.stack(
        [
            jax.random.randint(jax.random.fold_in(k_data, 0), (BATCH,), 0, NUM_ENT),
            jax.random.randint(jax.random.fold_in(k_data, 1), (BATCH,), 0, NUM_REL),
            jax.random.randint(jax.random.fold_in(k_data, 2), (BATCH,), 0, NUM_VAL),
        ],
        axis=1,
    ).astype(jnp.int32)

    # deterministic stand-ins for the module's np.random corruption choices
    corrupt_head_flag = int(jax.random.bernoulli(k_choice, 0.5))     # 1 -> corrupt 'h'
    rand_ent_idx = int(jax.random.randint(k_rent, (), 0, NUM_ENT))
    rand_val_idx = int(jax.random.randint(k_rval, (), 0, NUM_VAL))

    # run 1: small explicit tile -> multi-tile grid path
    scores = transe_forward(data, ent_embeds, rel_embeds, val_embeds, MARGIN,
                            corrupt_head_flag, rand_ent_idx, rand_val_idx,
                            tile_b=8)
    scores = jax.block_until_ready(scores)
    ref = _reference_forward(data, ent_embeds, rel_embeds, val_embeds, MARGIN,
                             corrupt_head_flag, rand_ent_idx, rand_val_idx)
    np.testing.assert_allclose(np.asarray(scores), np.asarray(ref),
                               rtol=1e-5, atol=1e-5)

    # run 2: default tile (auto-split into 2 tiles) + the other corruption branch
    flipped = 1 - corrupt_head_flag
    scores2 = transe_forward(data, ent_embeds, rel_embeds, val_embeds, MARGIN,
                             flipped, rand_ent_idx, rand_val_idx)
    scores2 = jax.block_until_ready(scores2)
    ref2 = _reference_forward(data, ent_embeds, rel_embeds, val_embeds, MARGIN,
                              flipped, rand_ent_idx, rand_val_idx)
    np.testing.assert_allclose(np.asarray(scores2), np.asarray(ref2),
                               rtol=1e-5, atol=1e-5)

    print("KERNEL_OK")
</pallas_src>

<mosaic_0001>
module attributes {stable_mosaic.version = 11 : i64} {
  func.func @_transe_kernel(%arg0: i32, %arg1: memref<8x128xf32, #tpu.memory_space<vmem>>, %arg2: memref<8x128xf32, #tpu.memory_space<vmem>>, %arg3: memref<1x128xf32, #tpu.memory_space<vmem>>, %arg4: memref<8x1xi32, #tpu.memory_space<vmem>>, %arg5: memref<128x128xf32, #tpu.memory_space<vmem>>, %arg6: memref<1x1x8xf32, #tpu.memory_space<vmem>>) attributes {dimension_semantics = [#tpu.dimension_semantics<parallel>], iteration_bounds = array<i64: 3>, scalar_prefetch = 0 : i64, scratch_operands = 0 : i64, tpu.core_type = #tpu.core_type<tc>, window_params = [{transform_indices = @transform_0, window_bounds = array<i64: 8, 128>}, {transform_indices = @transform_1, window_bounds = array<i64: 8, 128>}, {pipeline_mode = #tpu.pipeline_mode<synchronous>, transform_indices = @transform_2, window_bounds = array<i64: 1, 128>}, {transform_indices = @transform_3, window_bounds = array<i64: 8, 1>}, {pipeline_mode = #tpu.pipeline_mode<synchronous>, transform_indices = @transform_4, window_bounds = array<i64: 128, 128>}, {transform_indices = @transform_5, window_bounds = array<i64: 1, 1, 8>}]} {
    %cst = arith.constant 1.000000e+00 : f32
    %0 = vector.broadcast %cst : f32 to vector<128x1xf32>
    %cst_0 = arith.constant 1.000000e+00 : f32
    %1 = vector.broadcast %cst_0 : f32 to vector<8x128xf32>
    %c0 = arith.constant 0 : index
    %c0_1 = arith.constant 0 : index
    %2 = vector.load %arg1[%c0, %c0_1] : memref<8x128xf32, #tpu.memory_space<vmem>>, vector<8x128xf32>
    %3 = arith.mulf %2, %2 : vector<8x128xf32>
    %cst_2 = arith.constant dense<0.000000e+00> : vector<8x1xf32>
    %4 = tpu.matmul %3, %0, %cst_2 {dimension_numbers = #tpu.dot_dimension_numbers<[1], [0], [0], [1], [0, 0, 1, 1], [], []>} : vector<8x128xf32>, vector<128x1xf32>, vector<8x1xf32> -> vector<8x1xf32>
    %cst_3 = arith.constant 1.000000e-24 : f32
    %5 = vector.broadcast %cst_3 : f32 to vector<8x1xf32>
    %6 = arith.maximumf %4, %5 : vector<8x1xf32>
    %7 = math.rsqrt %6 : vector<8x1xf32>
    %8 = vector.broadcast %7 : vector<8x1xf32> to vector<8x128xf32>
    %9 = arith.mulf %2, %8 : vector<8x128xf32>
    %c0_4 = arith.constant 0 : index
    %c0_5 = arith.constant 0 : index
    %10 = vector.load %arg2[%c0_4, %c0_5] : memref<8x128xf32, #tpu.memory_space<vmem>>, vector<8x128xf32>
    %11 = arith.mulf %10, %10 : vector<8x128xf32>
    %cst_6 = arith.constant dense<0.000000e+00> : vector<8x1xf32>
    %12 = tpu.matmul %11, %0, %cst_6 {dimension_numbers = #tpu.dot_dimension_numbers<[1], [0], [0], [1], [0, 0, 1, 1], [], []>} : vector<8x128xf32>, vector<128x1xf32>, vector<8x1xf32> -> vector<8x1xf32>
    %cst_7 = arith.constant 1.000000e-24 : f32
    %13 = vector.broadcast %cst_7 : f32 to vector<8x1xf32>
    %14 = arith.maximumf %12, %13 : vector<8x1xf32>
    %15 = math.rsqrt %14 : vector<8x1xf32>
    %16 = vector.broadcast %15 : vector<8x1xf32> to vector<8x128xf32>
    %17 = arith.mulf %10, %16 : vector<8x128xf32>
    %c0_8 = arith.constant 0 : index
    %c0_9 = arith.constant 0 : index
    %18 = vector.load %arg3[%c0_8, %c0_9] : memref<1x128xf32, #tpu.memory_space<vmem>>, vector<1x128xf32>
    %19 = tpu.iota {dimensions = array<i32: 1>} : vector<8x128xi32>
    %c0_10 = arith.constant 0 : index
    %c0_11 = arith.constant 0 : index
    %20 = vector.load %arg4[%c0_10, %c0_11] : memref<8x1xi32, #tpu.memory_space<vmem>>, vector<8x1xi32>
    %21 = vector.broadcast %20 : vector<8x1xi32> to vector<8x128xi32>
    %22 = arith.cmpi eq, %19, %21 : vector<8x128xi32>
    %23 = arith.extui %22 : vector<8x128xi1> to vector<8x128xi32>
    %24 = arith.sitofp %23 : vector<8x128xi32> to vector<8x128xf32>
    %c0_12 = arith.constant 0 : index
    %c0_13 = arith.constant 0 : index
    %25 = vector.load %arg5[%c0_12, %c0_13] : memref<128x128xf32, #tpu.memory_space<vmem>>, vector<128x128xf32>
    %cst_14 = arith.constant dense<0.000000e+00> : vector<8x128xf32>
    %26 = tpu.matmul %24, %25, %cst_14 {dimension_numbers = #tpu.dot_dimension_numbers<[1], [0], [0], [1], [0, 0, 1, 1], [], []>} : vector<8x128xf32>, vector<128x128xf32>, vector<8x128xf32> -> vector<8x128xf32>
    %27 = arith.subf %26, %17 : vector<8x128xf32>
    %28 = arith.addf %9, %27 : vector<8x128xf32>
    %29 = vector.broadcast %18 : vector<1x128xf32> to vector<8x128xf32>
    %30 = arith.addf %29, %27 : vector<8x128xf32>
    %31 = arith.mulf %28, %28 : vector<8x128xf32>
    %cst_15 = arith.constant dense<0.000000e+00> : vector<8x8xf32>
    %32 = tpu.matmul %1, %31, %cst_15 {dimension_numbers = #tpu.dot_dimension_numbers<[1], [1], [0], [0], [0, 0, 1, 0], [], []>} : vector<8x128xf32>, vector<8x128xf32>, vector<8x8xf32> -> vector<8x8xf32>
    %33 = vector.extract_strided_slice %32 {offsets = [0, 0], sizes = [1, 8], strides = [1, 1]} : vector<8x8xf32> to vector<1x8xf32>
    %34 = math.sqrt %33 : vector<1x8xf32>
    %35 = arith.mulf %30, %30 : vector<8x128xf32>
    %cst_16 = arith.constant dense<0.000000e+00> : vector<8x8xf32>
    %36 = tpu.matmul %1, %35, %cst_16 {dimension_numbers = #tpu.dot_dimension_numbers<[1], [1], [0], [0], [0, 0, 1, 0], [], []>} : vector<8x128xf32>, vector<8x128xf32>, vector<8x8xf32> -> vector<8x8xf32>
    %37 = vector.extract_strided_slice %36 {offsets = [0, 0], sizes = [1, 8], strides = [1, 1]} : vector<8x8xf32> to vector<1x8xf32>
    %38 = math.sqrt %37 : vector<1x8xf32>
    %39 = arith.subf %34, %38 : vector<1x8xf32>
    %cst_17 = arith.constant 1.000000e+00 : f32
    %40 = vector.broadcast %cst_17 : f32 to vector<1x8xf32>
    %41 = arith.addf %39, %40 : vector<1x8xf32>
    %c0_18 = arith.constant 0 : index
    %c0_19 = arith.constant 0 : index
    %c0_20 = arith.constant 0 : index
    %42 = vector.load %arg6[%c0_18, %c0_19, %c0_20] : memref<1x1x8xf32, #tpu.memory_space<vmem>>, vector<1x1x8xf32>
    %43 = vector.shape_cast %42 : vector<1x1x8xf32> to vector<1x8xf32>
    %44 = vector.shape_cast %41 : vector<1x8xf32> to vector<1x1x8xf32>
    tpu.vector_store %arg6[%c0_18, %c0_19, %c0_20], %44 {strides = array<i32>} : memref<1x1x8xf32, #tpu.memory_space<vmem>>, vector<1x1x8xf32>,
    return
  }
  func.func @transform_0(%arg0: i32) -> (i32, i32) {
    %c0_i32 = arith.constant 0 : i32
    %c0_i32_0 = arith.constant 0 : i32
    return %arg0, %c0_i32 : i32, i32
  }
  func.func @transform_1(%arg0: i32) -> (i32, i32) {
    %c0_i32 = arith.constant 0 : i32
    %c0_i32_0 = arith.constant 0 : i32
    return %arg0, %c0_i32 : i32, i32
  }
  func.func @transform_2(%arg0: i32) -> (i32, i32) {
    %c0_i32 = arith.constant 0 : i32
    %c0_i32_0 = arith.constant 0 : i32
    %c0_i32_1 = arith.constant 0 : i32
    return %c0_i32, %c0_i32_0 : i32, i32
  }
  func.func @transform_3(%arg0: i32) -> (i32, i32) {
    %c0_i32 = arith.constant 0 : i32
    %c0_i32_0 = arith.constant 0 : i32
    return %arg0, %c0_i32 : i32, i32
  }
  func.func @transform_4(%arg0: i32) -> (i32, i32) {
    %c0_i32 = arith.constant 0 : i32
    %c0_i32_0 = arith.constant 0 : i32
    %c0_i32_1 = arith.constant 0 : i32
    return %c0_i32, %c0_i32_0 : i32, i32
  }
  func.func @transform_5(%arg0: i32) -> (i32, i32, i32) {
    %c0_i32 = arith.constant 0 : i32
    %c0_i32_0 = arith.constant 0 : i32
    %c0_i32_1 = arith.constant 0 : i32
    return %arg0, %c0_i32, %c0_i32_0 : i32, i32, i32
  }
}

</mosaic_0001>

<bundles_post_ra>
// kernel: tpu_custom_call.1
= control target key start
LH: loop header
LB: loop body
LE: loop exit
PB: predicated region body
PF: predicated region fallthrough
CT: control target
= control target key end

     0   :  { %10 = vsyncpa [#allocation3], 0  ;;  %s1566_s0 = inlined_call_operand.vmem [shape: f32[24,128], index: 0, kind: input, shape index: {}]   ;;  %s1567_s1 = inlined_call_operand.hbm [shape: f32[24,128], index: 1, kind: input, shape index: {}]   ;;  %s1568_s2 = inlined_call_operand.vmem [shape: f32[1,128], index: 2, kind: input, shape index: {}]   ;;  %s1569_s3 = inlined_call_operand.vmem [shape: s32[24,1], index: 3, kind: input, shape index: {}]   ;;  %s1570_s4 = inlined_call_operand.hbm [shape: f32[128,128], index: 4, kind: input, shape index: {}]   ;;  %s1571_s5 = inlined_call_operand.hbm [shape: f32[3,1,8], index: 5, kind: output, shape index: {}]  }
   0x1   :  { %12 = vsyncpa [#allocation3 + $0x1], 0 }
   0x2   :  { %13 = vsyncpa [#allocation6], 0 }
   0x3   :  { %14 = vsyncpa [#allocation4], 0 }
   0x4   :  { %16 = vsyncpa [#allocation4 + $0x1], 0  ;;  %s1315_s18 = smov 0   ;;  %s1317_s19 = smov 0  }
   0x5   :  { %s1319_s20 = smov 0   ;;  %s1321_s21 = smov 0  }
   0x6 LB: > { %s1336_s22 = sadd.s32 4294967295, %s1272_s21   ;;  %s826_s23 = sadd.s32 4294967294, %s1272_s21   ;;  %s1272_s21 = sphi %s1321_s21, %s1590_s21   ;;  %s1268_s20 = sphi %s1319_s20, %s1589_s20   ;;  %s1264_s19 = sphi %s1317_s19, %s1588_s19   ;;  %s1260_s18 = sphi %s1315_s18, %s1587_s18  }
   0x7   : > { %p68_p0 = scmp.ne.s32.totalorder %s1264_s19, %s1260_s18  ;;  %p1572_p1 = scmp.eq.s32.totalorder %s1336_s22, 0 }
   0x8   : > { %p166_p3 = scmp.eq.s32.totalorder %s826_s23, 2  ;;  %p827_p5 = scmp.ge.s32.totalorder %s1272_s21, 1 }
   0x9   : > { %p1345_p4 = por %p1572_p1, %p68_p0  ;;  %p173_p7 = scmp.lt.s32.totalorder %s1272_s21, 4 }
   0xa   : > { %p1350_p6 = por %p166_p3, %p68_p0  ;;  %s1274_s27 = smov [#allocation5]  }
   0xb   : > { %s1575_s24 = scalar_select %p1345_p4, 1, 0 }
   0xc   : > { %s1576_s25 = scalar_select %p1350_p6, 1, 0 }
   0xd   : > { %p1355_p8 = pnand %p827_p5, %p173_p7  ;;  %s188_s28 = sshll.u32 %s1274_s27, 4  ;;  %s189_s28 = int_to_ptr.vmem [resolvable:$true] %s188_s28 }
   0xe   : > { %s1368_s30 = sadd.s32 1, %s1272_s21   ;;  %s55_s6 = sadd.s32 1, %s1268_s20 }
   0xf   : > { %s1577_s26 = scalar_select %p1355_p8, 1, 0 }
  0x10   : > { %p1077_p9 = pneg %p1355_p8  ;;  %s52_s7 = ssub.s32 %s1272_s21, %s1368_s30 }
  0x11   : > { %s1144_s10 = scalar_lea.hbm %s1570_s4, 2048 }
  0x12   : > { %p1363_p10 = pnand %p1077_p9, %p1572_p1  ;;  %p1145_p11 = scmp.ne.s32.totalorder %s1570_s4, %s1144_s10 }
  0x13   : > { %p1151_p3 = scmp.lt.u32.totalorder %s1144_s10, %s1570_s4 }
  0x14   : > { %p1146_p12 = pneg %p1363_p10 }
  0x16   : > { %p1147_p13 = pnand %p1146_p12, %p1145_p11 }
  0x18   : > { %p1148_p0 = pneg %p1147_p13 }
  0x1a   : > { %p1153_p5 = pnand %p1151_p3, %p1148_p0 }
  0x1c   : > { %1156 = shalt.err (!%p1153_p5)
}
  0x1d   : > { %s1157_s15 = scalar_lea.vmem %s189_s28, 2048  ;;  %p1165_p2 = scmp.lt.s32.totalorder %s189_s28, %s189_s28 }
  0x1e   : > { %p1158_p7 = scmp.ne.s32.totalorder %s189_s28, %s1157_s15  ;;  %p1166_p6 = scmp.lt.s32.totalorder %s1157_s15, %s1157_s15 }
  0x20   : > { %p1160_p9 = pnand %p1158_p7, %p1146_p12  ;;  %p1167_p4 = por %p1166_p6, %p1165_p2 }
  0x22   : > { %p1161_p1 = pneg %p1160_p9 }
  0x24   : > { %p1168_p8 = pnand %p1167_p4, %p1161_p1 }
  0x26   : > { %1171 = shalt.err (!%p1168_p8)
}
  0x27   : > { %s1275_s16 = smov 128   ;;  %s1276_s17 = smov 8  }
  0x28   : > { %1080 = dma.hbm_to_vmem [thread:$0]  (!%p1363_p10), %s1570_s4, 2048, %s189_s28, [#allocation6], %s1275_s16, %s1275_s16, %s1276_s17  }
  0x29   : > { %p53_p11 = scmp.eq.s32.totalorder %s52_s7, 0  ;;  %p62_p2 = scmp.ne.s32.totalorder %s1268_s20, %s1264_s19 }
  0x2a   : > { %p63_p1 = scmp.eq.s32.totalorder %s1272_s21, 0  ;;  %p1090_p4 = scmp.lt.s32.totalorder %s1272_s21, 3 }
  0x2b   : > { %s1394_s8 = scalar_select %p53_p11, %s1268_s20, %s55_s6  }
  0x2c   : > { %p64_p6 = por %p63_p1, %p62_p2  ;;  %p1579_p8 = scmp.eq.s32.totalorder %s1336_s22, 2 }
  0x2d   : > { %s209_s10 = sand.u32 1, %s1268_s20   ;;  %s831_s11 = sshll.u32 %s1272_s21, 7 }
  0x2e   : > { %p1398_p12 = por %p1579_p8, %p62_p2  ;;  %s830_s12 = sshll.u32 %s209_s10, 3 }
  0x2f   : > { %s1407_s14 = scalar_lea.hbm %s1567_s1, %s831_s11  ;;  %s213_s28 = scalar_lea.vmem [#allocation2], %s830_s12 }
  0x30   : > { %s220_s6 = sshll.u32 %s213_s28, 4  ;;  %p1409_p10 = pnand %p1090_p4, %p64_p6  ;;  %s1413_s6 = int_to_ptr.vmem [resolvable:$true] %s220_s6 }
  0x31   : > { %s210_s15 = scalar_lea.sflag [#allocation3], %s209_s10  ;;  %s1172_s16 = scalar_lea.hbm %s1407_s14, 128 }
  0x32   : > { %p1173_p13 = scmp.ne.s32.totalorder %s1407_s14, %s1172_s16  ;;  %p1174_p0 = pneg %p1409_p10 }
  0x33   : > { %s1177_s27 = scalar_lea.hbm %s1567_s1, 384  ;;  %p1178_p7 = scmp.lt.u32.totalorder %s1407_s14, %s1567_s1 }
  0x34   : > { %p1175_p3 = pnand %p1174_p0, %p1173_p13  ;;  %p1179_p9 = scmp.lt.u32.totalorder %s1177_s27, %s1172_s16 }
  0x35   : > { %p1181_p2 = scmp.lt.u32.totalorder %s1172_s16, %s1407_s14 }
  0x36   : > { %p1176_p5 = pneg %p1175_p3  ;;  %p1180_p11 = por %p1179_p9, %p1178_p7 }
  0x38   : > { %p1182_p1 = por %p1181_p2, %p1180_p11 }
  0x3a   : > { %p1183_p4 = pnand %p1182_p1, %p1176_p5 }
  0x3c   : > { %1186 = shalt.err (!%p1183_p4)
}
  0x3d   : > { %s1187_s10 = scalar_lea.vmem %s1413_s6, 128  ;;  %s1277_s29 = smov [#allocation2]  }
  0x3e   : > { %p1188_p6 = scmp.ne.s32.totalorder %s1413_s6, %s1187_s10  ;;  %s1192_s13 = sshll.u32 %s1277_s29, 4  ;;  %s1193_s13 = int_to_ptr.vmem [resolvable:$false] %s1192_s13 }
  0x3f   : > { %s1194_s28 = scalar_lea.vmem %s1193_s13, 256  ;;  %p1195_p3 = scmp.lt.s32.totalorder %s1413_s6, %s1193_s13 }
  0x40   : > { %p1190_p8 = pnand %p1188_p6, %p1174_p0  ;;  %p1196_p7 = scmp.lt.s32.totalorder %s1194_s28, %s1187_s10 }
  0x42   : > { %p1191_p13 = pneg %p1190_p8  ;;  %p1197_p9 = por %p1196_p7, %p1195_p3 }
  0x44   : > { %p1198_p11 = pnand %p1197_p9, %p1191_p13 }
  0x46   : > { %1201 = shalt.err (!%p1198_p11)
}
  0x47   : > { %1084 = dma.hbm_to_vmem [thread:$0]  (!%p1409_p10), %s1407_s14, 128, %s1413_s6, %s210_s15  }
  0x48   : > { %p1582_p5 = scmp.ne.s32.totalorder %s1577_s26, 0 }
  0x49   : > { %s1443_s16 = sand.u32 (!%p1582_p5), 1, %s1264_s19   ;;  %p1583_p0 = scmp.ne.s32.totalorder (!%p1582_p5), %s1575_s24, 0 }
  0x4a   : > { %236 = sbr.rel (%p1582_p5) target bundleno = 731 (0x2db), region = 40  ;;  %s833_s17 = sshll.u32 (!%p1582_p5), %s1443_s16, 3 }
  0x4b   : > { %s239_s23 = scalar_lea.sflag (!%p1582_p5), [#allocation3], %s1443_s16  ;;  %s1447_s27 = scalar_lea.vmem (!%p1582_p5), [#allocation2], %s833_s17 }
  0x51   : > { %1247 = dma.done.wait (%p1583_p0), %s239_s23, 128  }
  0x52   : > { %1249 = vsyncadd (%p1583_p0), %s239_s23, 4294967168  ;;  %p1584_p10 = scmp.eq.s32.totalorder %s1336_s22, 0 }
  0x54   : > { %1251 = dma.done.wait (%p1584_p10), [#allocation6], 2048   ;;  %p1585_p2 = pmov %p1584_p10 }
  0x55   : > { %v1278_v0 = vmov 0.0|0.0   ;;  %p280_p1 = scmp.lt.s32.totalorder %s1336_s22, 2  ;;  %v1279_v1 = vmov 1.0|1.0   ;;  %vm1280_vm0 = vmmov 0   ;;  %v1281_v2 = vmov 0.0  }
  0x56   : > { %1253 = vsyncadd (%p1585_p2), [#allocation6], 4294965248  ;;  %1029 = vmatprep.subr.bf16.mxu1 %v1278_v0  ;;  %1013 = vmatprep.subr.bf16.mxu0 %v1278_v0  ;;  %v1282_v3 = vmov 0   ;;  %v1487_v5 = vld [vmem:[%s1447_s27] sm:$0xff]  ;;  %v458_v7 = vld [vmem:[#allocation5] sm:$0xff]  ;;  %v449_v33 = vlaneseq  ;;  %v1283_v36 = vmov 1.0  }
  0x57   : > { %1030 = vmatpush3.bf16.msra.mxu1 %v1279_v1  ;;  %1014 = vmatpush3.bf16.msra.mxu0 %v1279_v1  ;;  %s1463_s24 = scalar_select %p280_p1, %s1336_s22, 2  ;;  %v459_v8 = vld [vmem:[#allocation5 + $0x8] sm:$0xff]  ;;  %v369_v9 = vmul.f32 %v1487_v5, %v1487_v5  ;;  %v460_v12 = vld [vmem:[#allocation5 + $0x10] sm:$0xff]  ;;  %v461_v13 = vld [vmem:[#allocation5 + $0x18] sm:$0xff]  ;;  %vm711_vm6 = vcmask 57344  }
  0x58   : > { %1031 = vmatprep.subr.bf16.mxu1 %v1278_v0  ;;  %1015 = vmatprep.subr.bf16.mxu0 %v1278_v0  ;;  %v1046_v11 = vpack.c.bf16 %v459_v8, %v458_v7  ;;  %v1049_v14 = vpack.c.bf16 %v461_v13, %v460_v12  ;;  %v462_v15 = vld [vmem:[#allocation5 + $0x20] sm:$0xff]  ;;  %v463_v16 = vld [vmem:[#allocation5 + $0x28] sm:$0xff]  ;;  %v464_v18 = vld [vmem:[#allocation5 + $0x30] sm:$0xff]  ;;  %v450_v34 = vand.u32 127, %v449_v33  ;;  %s840_s13 = sshll.u32 %s1336_s22, 4  ;;  %s279_s28 = scalar_lea.vmem [#allocation7], %s1443_s16 }
  0x59   : > { %965 = vmatprep.mubr.msk.f32.mxu1 %vm1280_vm0, %v1281_v2  ;;  %930 = vmatprep.mubr.msk.f32.mxu0 %vm1280_vm0, %v1281_v2  ;;  %s835_s26 = sshll.u32 %s1463_s24, 3  ;;  %v1052_v17 = vpack.c.bf16 %v463_v16, %v462_v15  ;;  %v465_v19 = vld [vmem:[#allocation5 + $0x38] sm:$0xff]  ;;  %v466_v21 = vld [vmem:[#allocation5 + $0x40] sm:$0xff]  ;;  %v467_v22 = vld [vmem:[#allocation5 + $0x48] sm:$0xff]  ;;  %s726_s17 = sshll.u32 %s279_s28, 4  ;;  %s1525_s17 = int_to_ptr.vmem [resolvable:$true] %s726_s17 }
  0x5a   : > { %1134 = vset.pattern.permute.xlu0 %v1282_v3  ;;  %1135 = vset.pattern.permute.xlu1 %v1282_v3  ;;  %s287_s7 = scalar_lea.vmem %s1569_s3, %s835_s26  ;;  %s283_s12 = scalar_lea.vmem %s1566_s0, %s835_s26  ;;  %v1055_v20 = vpack.c.bf16 %v465_v19, %v464_v18  ;;  %v1058_v23 = vpack.c.bf16 %v467_v22, %v466_v21  ;;  %v468_v24 = vld [vmem:[#allocation5 + $0x50] sm:$0xff]  ;;  %v469_v25 = vld [vmem:[#allocation5 + $0x58] sm:$0xff]  ;;  %v470_v27 = vld [vmem:[#allocation5 + $0x60] sm:$0xff] }
  0x5b   : > { %1032 = vmatpush3.bf16.msra.mxu1 %v1279_v1  ;;  %1016 = vmatpush3.bf16.msra.mxu0 %v1279_v1  ;;  %v451_v4 = vld [vmem:[%s287_s7] sm:$0xff]  ;;  %v1061_v26 = vpack.c.bf16 %v469_v25, %v468_v24  ;;  %v471_v28 = vld [vmem:[#allocation5 + $0x68] sm:$0xff]  ;;  %v473_v31 = vld [vmem:[#allocation5 + $0x78] sm:$0xff]  ;;  %s1523_s24 = scalar_lea.hbm %s1571_s5, %s840_s13  ;;  %s714_s26 = scalar_lea.sflag [#allocation4], %s1443_s16 }
  0x5c   : > { %1033 = vmatprep.subr.bf16.mxu1 %v1278_v0  ;;  %1017 = vmatprep.subr.bf16.mxu0 %v1278_v0  ;;  %v1489_v6 = vld [vmem:[%s283_s12] sm:$0xff]  ;;  %v1064_v29 = vpack.c.bf16 %v471_v28, %v470_v27  ;;  %s1202_s14 = scalar_lea.vmem %s1525_s17, 16  ;;  %s1284_s22 = smov [#allocation7]  }
  0x5d   : > { %453 = vperm.xlu0 %1134, %v451_v4   ;;  %v289_v10 = vmul.f32 %v1489_v6, %v1489_v6  ;;  %v472_v30 = vld [vmem:[#allocation5 + $0x70] sm:$0xff]  ;;  %p1203_p4 = scmp.ne.s32.totalorder %s1525_s17, %s1202_s14  ;;  %s1206_s6 = sshll.u32 %s1284_s22, 4  ;;  %s1207_s6 = int_to_ptr.vmem [resolvable:$false] %s1206_s6 }
  0x5e   : > { %v1067_v32 = vpack.c.bf16 %v473_v31, %v472_v30  ;;  %v839_v52 = vld [vmem:[%s1568_s2] ss:$0 sm:$0xff]  ;;  %s1208_s7 = scalar_lea.vmem %s1207_s6, 32  ;;  %p1209_p13 = scmp.lt.s32.totalorder %s1525_s17, %s1207_s6 }
  0x5f   : > { %1034 = vmatpush3.bf16.msra.mxu1 %v1279_v1  ;;  %1018 = vmatpush3.bf16.msra.mxu0 %v1279_v1  ;;  %p1204_p6 = pnand %p1203_p4, %p1398_p12  ;;  %p1210_p3 = scmp.lt.s32.totalorder %s1208_s7, %s1202_s14 }
  0x60   : > { %1035 = vmatprep.subr.bf16.mxu1 %v1278_v0  ;;  %1019 = vmatprep.subr.bf16.mxu0 %v1278_v0 }
  0x61   : > { %p1205_p8 = pneg %p1204_p6  ;;  %p1211_p7 = por %p1210_p3, %p1209_p13 }
  0x63   : > { %1036 = vmatpush3.bf16.msra.mxu1 %v1279_v1  ;;  %1020 = vmatpush3.bf16.msra.mxu0 %v1279_v1  ;;  %p1212_p9 = pnand %p1211_p7, %p1205_p8 }
  0x64   : > { %1037 = vmatprep.subr.bf16.mxu1 %v1278_v0  ;;  %1021 = vmatprep.subr.bf16.mxu0 %v1278_v0 }
  0x67   : > { %1038 = vmatpush3.bf16.msra.mxu1 %v1279_v1  ;;  %1022 = vmatpush3.bf16.msra.mxu0 %v1279_v1 }
  0x68   : > { %1039 = vmatprep.subr.bf16.mxu1 %v1278_v0  ;;  %1023 = vmatprep.subr.bf16.mxu0 %v1278_v0 }
  0x6b   : > { %1040 = vmatpush3.bf16.msra.mxu1 %v1279_v1  ;;  %1024 = vmatpush3.bf16.msra.mxu0 %v1279_v1 }
  0x6c   : > { %1041 = vmatprep.subr.bf16.mxu1 %v1278_v0  ;;  %1025 = vmatprep.subr.bf16.mxu0 %v1278_v0 }
  0x6f   : > { %1042 = vmatpush3.bf16.msra.mxu1 %v1279_v1  ;;  %1026 = vmatpush3.bf16.msra.mxu0 %v1279_v1 }
  0x70   : > { %1043 = vmatprep.subr.bf16.mxu1 %v1278_v0  ;;  %1027 = vmatprep.subr.bf16.mxu0 %v1278_v0 }
  0x73   : > { %1044 = vmatpush3.bf16.msra.mxu1 %v1279_v1  ;;  %1028 = vmatpush3.bf16.msra.mxu0 %v1279_v1 }
  0x74   : > { %1045 = vmatprep.subr.bf16.mxu0 %v1278_v0  ;;  %1003 = vmatprep.subr.mxu1 %v1281_v2 }
  0x76   : > { %966 = vmatmul.mubr.f32.vlgmr.msra.gmra.mrb[0].mxu1 %v369_v9  ;;  %931 = vmatmul.mubr.f32.vlgmr.msra.gmra.mrb[0].mxu0 %v289_v10 }
  0x77   : > { %1047 = vmatpush3.bf16.msra.mxu0 %v1046_v11  ;;  %1000 = vmatprep.mubr.msk.f32.mxu0 %vm1280_vm0, %v1281_v2 }
  0x78   : > { %1048 = vmatprep.subr.bf16.mxu0 %v1278_v0  ;;  %1005 = vmatprep.mubr.msk.f32.mxu1 %vm1280_vm0, %v1281_v2 }
  0x7b   : > { %1050 = vmatpush3.bf16.msra.mxu0 %v1049_v14 }
  0x7c   : > { %1051 = vmatprep.subr.bf16.mxu0 %v1278_v0 }
  0x7f   : > { %1053 = vmatpush3.bf16.msra.mxu0 %v1052_v17 }
  0x80   : > { %1054 = vmatprep.subr.bf16.mxu0 %v1278_v0 }
  0x83   : > { %1056 = vmatpush3.bf16.msra.mxu0 %v1055_v20 }
  0x84   : > { %1057 = vmatprep.subr.bf16.mxu0 %v1278_v0 }
  0x87   : > { %1059 = vmatpush3.bf16.msra.mxu0 %v1058_v23 }
  0x88   : > { %1060 = vmatprep.subr.bf16.mxu0 %v1278_v0 }
  0x8b   : > { %1062 = vmatpush3.bf16.msra.mxu0 %v1061_v26 }
  0x8c   : > { %1063 = vmatprep.subr.bf16.mxu0 %v1278_v0 }
  0x8f   : > { %1065 = vmatpush3.bf16.msra.mxu0 %v1064_v29 }
  0x90   : > { %1066 = vmatprep.subr.bf16.mxu0 %v1278_v0 }
  0x93   : > { %1068 = vmatpush3.bf16.msra.mxu0 %v1067_v32 }
  0xdc   : > { %v454_v35 = vpop.permute.xlu0 %453 }
  0xdd   : > { %vm455_vm1 = vcmp.eq.s32.totalorder %v450_v34, %v454_v35 }
  0xde   : > { %1001 = vmatmul.mubr.msk.f32.vlgmr.msra.gmra.mrb[2].mxu0 %vm455_vm1, %v1283_v36 }
 0x149   : > { %v436_v37 = vpop.f32.mrb[0].mxu1  ;;  %v356_v38 = vpop.f32.mrb[0].mxu0 }
 0x14a   : > { %v440_v39 = vmax.f32 %v436_v37, 1e-24  ;;  %v360_v40 = vmax.f32 %v356_v38, 1e-24  ;;  %v967_v41 = vpop.f32.mrb[1].mxu1  ;;  %v932_v42 = vpop.f32.mrb[1].mxu0 }
 0x14c   : > { %1136 = vrsqrt.f32 %v440_v39 }
 0x14d   : > { %1138 = vrsqrt.f32 %v360_v40 }
 0x156   : > { %v1137_v43 = vpop.eup %1136 }
 0x157   : > { %v1139_v44 = vpop.eup %1138  ;;  %444 = vperm.xlu0 %1134, %v1137_v43  }
 0x158   : > { %364 = vperm.xlu1 %1135, %v1139_v44  }
 0x1b1   : > { %v540_v45 = vpop.f32.mrb[2].mxu0 }
 0x1b2   : > { %v1002_v46 = vpop.f32.mrb[3].mxu0 }
 0x1d6   : > { %v445_v47 = vpop.permute.xlu0 %444 }
 0x1d7   : > { %v447_v48 = vmul.f32 %v445_v47, %v1487_v5  ;;  %v365_v49 = vpop.permute.xlu1 %364 }
 0x1d8   : > { %v367_v50 = vmul.f32 %v365_v49, %v1489_v6 }
 0x1d9   : > { %v544_v51 = vsub.f32 %v540_v45, %v447_v48 }
 0x1db   : > { %v545_v53 = vadd.f32 %v544_v51, %v367_v50  ;;  %v552_v54 = vadd.f32 %v839_v52, %v544_v51 }
 0x1dd   : > { %v553_v55 = vmul.f32 %v545_v53, %v545_v53  ;;  %v631_v56 = vmul.f32 %v552_v54, %v552_v54 }
 0x1df   : > { %1004 = vmatpush3.xpose.msra.mxu1 %v553_v55 }
 0x1e0   : > { %1008 = vmatprep.subr.mxu1 %v1281_v2 }
 0x1e2   : > { %1006 = vmatmul.mubr.f32.vlgmr.msra.gmra.mrb[2].mxu1 %v1283_v36 }
 0x1e3   : > { %1009 = vmatpush3.xpose.msra.mxu1 %v631_v56  ;;  %1010 = vmatprep.mubr.msk.f32.mxu1 %vm1280_vm0, %v1281_v2 }
 0x1e6   : > { %1011 = vmatmul.mubr.f32.vlgmr.msra.gmra.mrb[4].mxu1 %v1283_v36 }
 0x2b5   : > { %v620_v57 = vpop.f32.mrb[2].mxu1 }
 0x2b6   : > { %1140 = vrsqrt.f32 %v620_v57  ;;  %v1007_v58 = vpop.f32.mrb[3].mxu1  ;;  %vm626_vm2 = vcmp.eq.f32.partialorder %v620_v57, inf  ;;  %v629_v3 = vand.u32 2147483648, %v620_v57  ;;  %vm628_vm4 = vcmp.eq.f32.partialorder %v620_v57, 0.0 }
 0x2b9   : > { %v698_v59 = vpop.f32.mrb[4].mxu1 }
 0x2ba   : > { %1142 = vrsqrt.f32 %v698_v59  ;;  %v1012_v60 = vpop.f32.mrb[5].mxu1  ;;  %vm704_vm3 = vcmp.eq.f32.partialorder %v698_v59, inf  ;;  %v707_v4 = vand.u32 2147483648, %v698_v59  ;;  %vm706_vm5 = vcmp.eq.f32.partialorder %v698_v59, 0.0 }
 0x2c0   : > { %v1141_v61 = vpop.eup %1140 }
 0x2c1   : > { %v625_v62 = vmul.f32 %v1141_v61, %v620_v57 }
 0x2c3   : > { %v627_v0 = vsel %vm626_vm2, %v620_v57, %v625_v62 }
 0x2c4   : > { %v1143_v63 = vpop.eup %1142  ;;  %v630_v5 = vsel %vm628_vm4, %v629_v3, %v627_v0 }
 0x2c5   : > { %v703_v1 = vmul.f32 %v1143_v63, %v698_v59 }
 0x2c7   : > { %v705_v2 = vsel %vm704_vm3, %v698_v59, %v703_v1 }
 0x2c8   : > { %v708_v6 = vsel %vm706_vm5, %v707_v4, %v705_v2 }
 0x2c9   : > { %v709_v7 = vsub.f32 %v630_v5, %v708_v6 }
 0x2cb   : > { %v710_v8 = vadd.f32 1.0, %v709_v7 }
 0x2cd   : > { %712 = vst.msk [vmem:[%s279_s28] sm:$0x1] %vm711_vm6, %v710_v8 }
 0x2ce   : > { %1215 = shalt.err (!%p1212_p9)
}
 0x2cf   : > { %s1216_s16 = scalar_lea.hbm %s1523_s24, 16  ;;  %s1220_s12 = scalar_lea.hbm %s1571_s5, 48 }
 0x2d0   : > { %p1217_p11 = scmp.ne.s32.totalorder %s1523_s24, %s1216_s16  ;;  %p1221_p10 = scmp.lt.u32.totalorder %s1523_s24, %s1571_s5 }
 0x2d1   : > { %p1222_p2 = scmp.lt.u32.totalorder %s1220_s12, %s1216_s16  ;;  %p1224_p4 = scmp.lt.u32.totalorder %s1216_s16, %s1523_s24 }
 0x2d2   : > { %p1218_p5 = pnand %p1217_p11, %p1398_p12 }
 0x2d3   : > { %p1223_p1 = por %p1222_p2, %p1221_p10 }
 0x2d4   : > { %p1219_p0 = pneg %p1218_p5 }
 0x2d5   : > { %p1225_p6 = por %p1224_p4, %p1223_p1 }
 0x2d7   : > { %p1226_p8 = pnand %p1225_p6, %p1219_p0 }
 0x2d9   : > { %1229 = shalt.err (!%p1226_p8)
}
 0x2da   : > { %1075 = dma.vmem_to_hbm [thread:$0]  (%p1398_p12), %s1525_s17, 16, %s1523_s24, %s714_s26  }
 0x2db PF: > { %p1092_p13 = scmp.ge.s32.totalorder %s1272_s21, 2  ;;  %s738_s13 = sand.u32 1, %s1260_s18  }
 0x2dc   : > { %p1586_p3 = scmp.ne.s32.totalorder %s1576_s25, 0  ;;  %s739_s28 = scalar_lea.sflag [#allocation4], %s738_s13 }
 0x2de   : > { %p1086_p7 = pnand %p1092_p13, %p1586_p3 }
 0x2e0   : > { %1255 = dma.done.wait (!%p1086_p7), %s739_s28, 16  }
 0x2e1   : > { %1257 = vsyncadd (!%p1086_p7), %s739_s28, 4294967280  ;;  %p19_p9 = scmp.ge.s32.totalorder %s1368_s30, 5   ;;  %s1587_s18 = smov %s1264_s19 }
 0x2e2   : > { %s1588_s19 = smov %s1268_s20  ;;  %s1589_s20 = smov %s1394_s8 }
 0x2e3   : > { %s1590_s21 = smov %s1368_s30  ;;  %21 = sbr.rel (!%p19_p9) target bundleno = 6 (0x6), region = 95 }
 0x2ea   :  { %743 = vsyncpa [#allocation3], 1 }
 0x2eb   :  { %745 = vsyncpa [#allocation3 + $0x1], 1 }
 0x2ec   :  { %746 = vsyncpa [#allocation6], 1 }
 0x2ed   :  { %747 = vsyncpa [#allocation4], 1 }
 0x2ee   :  { %749 = vsyncpa [#allocation4 + $0x1], 1 }

</bundles_post_ra>
